<compile_context>
chip_gen: v7x
topology: tpu7x:2x2x1
jax: 0.10.0
libtpu: 0.0.40
codegen_flags: <defaults>
</compile_context>

<pallas_src>
import jax
import jax.numpy as jnp
from jax.experimental import pallas as pl
from jax.experimental.pallas import tpu as pltpu


def _round_up(n: int, m: int) -> int:
    return ((n + m - 1) // m) * m


def mlp_kernel(x_ref, w1_ref, b1_ref, w2_ref, b2_ref, o_ref):
    # Layer 1 on the MXU: [TB, IN_PAD] @ [IN_PAD, H] -> [TB, H], bias + ReLU on VPU.
    h = jnp.dot(x_ref[...], w1_ref[...], preferred_element_type=jnp.float32)
    h = jnp.maximum(h + b1_ref[...], 0.0)
    # Layer 2 as VPU multiply + XLU lane reduction (H -> 1), plus SMEM scalar bias.
    out = jnp.sum(h * w2_ref[...], axis=-1, keepdims=True) + b2_ref[0, 0]
    o_ref[...] = out.astype(o_ref.dtype)


def prepare_params(w1, b1, w2, b2, *, lane=128):
    """One-time re-layout of PyTorch-layout params into kernel-friendly form.

    w1: [H, IN]  -> w1p: [IN_PAD, H]  (transposed + zero-padded K, done once)
    b1: [H]      -> b1r: [1, H]
    w2: [1, H]   -> w2r: [1, H]
    b2: [1]      -> b2r: [1, 1]       (SMEM scalar)
    """
    H, IN = w1.shape
    in_pad = _round_up(IN, lane)
    w1p = jnp.zeros((in_pad, H), w1.dtype).at[:IN, :].set(w1.T)
    b1r = b1.reshape(1, H)
    w2r = w2.reshape(1, H)
    b2r = b2.reshape(1, 1)
    return w1p, b1r, w2r, b2r


def mlp_forward(x, params, *, block_b=512):
    """x: [B, IN] float32; params from prepare_params(). Returns [B, 1]."""
    w1p, b1r, w2r, b2r = params
    B, IN = x.shape
    IN_PAD, H = w1p.shape

    # Batch tile: multiple of 8 sublanes, capped so VMEM stays small on v7x.
    TB = min(block_b, _round_up(B, 8))
    B_PAD = _round_up(B, TB)

    # Per-call padding of the activation only (zero rows / zero K-lanes).
    x_p = jnp.pad(x, ((0, B_PAD - B), (0, IN_PAD - IN)))

    grid = (B_PAD // TB,)

    flops = 2 * B_PAD * H * (IN_PAD + 1)
    bytes_accessed = 4 * (B_PAD * IN_PAD + IN_PAD * H + 2 * H + 1 + B_PAD)

    out = pl.pallas_call(
        mlp_kernel,
        out_shape=jax.ShapeDtypeStruct((B_PAD, 1), x.dtype),
        grid=grid,
        in_specs=[
            pl.BlockSpec((TB, IN_PAD), lambda i: (i, 0)),          # x tile (pipelined)
            pl.BlockSpec((IN_PAD, H), lambda i: (0, 0)),           # w1 resident
            pl.BlockSpec((1, H), lambda i: (0, 0)),                # b1 resident
            pl.BlockSpec((1, H), lambda i: (0, 0)),                # w2 row resident
            pl.BlockSpec(memory_space=pltpu.MemorySpace.SMEM),     # b2 scalar
        ],
        out_specs=pl.BlockSpec((TB, 1), lambda i: (i, 0)),
        compiler_params=pltpu.CompilerParams(
            dimension_semantics=("parallel",),
        ),
        cost_estimate=pl.CostEstimate(
            flops=flops, transcendentals=0, bytes_accessed=bytes_accessed
        ),
    )(x_p, w1p, b1r, w2r, b2r)

    return out[:B]


if __name__ == "__main__":
    key = jax.random.PRNGKey(0)
    k_x, k_w1, k_b1, k_w2, k_b2 = jax.random.split(key, 5)

    B, IN, H, OUT = 8, 331, 256, 1

    # Deterministic parameter init matching nn.init.normal_(param, 0, 0.01).
    x = jax.random.normal(k_x, (B, IN), dtype=jnp.float32)
    w1 = 0.01 * jax.random.normal(k_w1, (H, IN), dtype=jnp.float32)
    b1 = 0.01 * jax.random.normal(k_b1, (H,), dtype=jnp.float32)
    w2 = 0.01 * jax.random.normal(k_w2, (OUT, H), dtype=jnp.float32)
    b2 = 0.01 * jax.random.normal(k_b2, (OUT,), dtype=jnp.float32)

    # One-time parameter re-layout (not on the per-call hot path).
    params = prepare_params(w1, b1, w2, b2)

    out = jax.block_until_ready(mlp_forward(x, params))

    # Correctness check against pure-JAX reference of the PyTorch forward.
    ref = jnp.maximum(x @ w1.T + b1, 0.0) @ w2.T + b2
    assert out.shape == (B, OUT)
    assert jnp.allclose(out, ref, atol=1e-5, rtol=1e-5)

    print("KERNEL_OK")
</pallas_src>

<mosaic_0001>
module attributes {stable_mosaic.version = 11 : i64} {
  func.func @mlp_kernel(%arg0: i32, %arg1: memref<8x384xf32, #tpu.memory_space<vmem>>, %arg2: memref<384x256xf32, #tpu.memory_space<vmem>>, %arg3: memref<1x256xf32, #tpu.memory_space<vmem>>, %arg4: memref<1x256xf32, #tpu.memory_space<vmem>>, %arg5: memref<1x1xf32, #tpu.memory_space<smem>>, %arg6: memref<8x1xf32, #tpu.memory_space<vmem>>) attributes {dimension_semantics = [#tpu.dimension_semantics<parallel>], iteration_bounds = array<i64: 1>, scalar_prefetch = 0 : i64, scratch_operands = 0 : i64, tpu.core_type = #tpu.core_type<tc>, window_params = [{transform_indices = @transform_0, window_bounds = array<i64: 8, 384>}, {pipeline_mode = #tpu.pipeline_mode<synchronous>, transform_indices = @transform_1, window_bounds = array<i64: 384, 256>}, {pipeline_mode = #tpu.pipeline_mode<synchronous>, transform_indices = @transform_2, window_bounds = array<i64: 1, 256>}, {pipeline_mode = #tpu.pipeline_mode<synchronous>, transform_indices = @transform_3, window_bounds = array<i64: 1, 256>}, {transform_indices = @transform_4, window_bounds = array<i64: 1, 1>}, {transform_indices = @transform_5, window_bounds = array<i64: 8, 1>}]} {
    %c0 = arith.constant 0 : index
    %c0_0 = arith.constant 0 : index
    %0 = vector.load %arg1[%c0, %c0_0] : memref<8x384xf32, #tpu.memory_space<vmem>>, vector<8x384xf32>
    %c0_1 = arith.constant 0 : index
    %c0_2 = arith.constant 0 : index
    %1 = vector.load %arg2[%c0_1, %c0_2] : memref<384x256xf32, #tpu.memory_space<vmem>>, vector<384x256xf32>
    %cst = arith.constant dense<0.000000e+00> : vector<8x256xf32>
    %2 = tpu.matmul %0, %1, %cst {dimension_numbers = #tpu.dot_dimension_numbers<[1], [0], [0], [1], [0, 0, 1, 1], [], []>} : vector<8x384xf32>, vector<384x256xf32>, vector<8x256xf32> -> vector<8x256xf32>
    %c0_3 = arith.constant 0 : index
    %c0_4 = arith.constant 0 : index
    %3 = vector.load %arg3[%c0_3, %c0_4] : memref<1x256xf32, #tpu.memory_space<vmem>>, vector<1x256xf32>
    %4 = vector.broadcast %3 : vector<1x256xf32> to vector<8x256xf32>
    %5 = arith.addf %2, %4 : vector<8x256xf32>
    %cst_5 = arith.constant 0.000000e+00 : f32
    %6 = vector.broadcast %cst_5 : f32 to vector<8x256xf32>
    %7 = arith.maximumf %5, %6 : vector<8x256xf32>
    %c0_6 = arith.constant 0 : index
    %c0_7 = arith.constant 0 : index
    %8 = vector.load %arg4[%c0_6, %c0_7] : memref<1x256xf32, #tpu.memory_space<vmem>>, vector<1x256xf32>
    %9 = vector.broadcast %8 : vector<1x256xf32> to vector<8x256xf32>
    %10 = arith.mulf %7, %9 : vector<8x256xf32>
    %cst_8 = arith.constant dense<0.000000e+00> : vector<8xf32>
    %11 = vector.multi_reduction <add>, %10, %cst_8 [1] : vector<8x256xf32> to vector<8xf32>
    %12 = vector.shape_cast %11 : vector<8xf32> to vector<8x1xf32>
    %c0_9 = arith.constant 0 : index
    %c0_10 = arith.constant 0 : index
    %13 = memref.load %arg5[%c0_9, %c0_10] : memref<1x1xf32, #tpu.memory_space<smem>>
    %14 = vector.broadcast %13 : f32 to vector<8x1xf32>
    %15 = arith.addf %12, %14 : vector<8x1xf32>
    %c0_11 = arith.constant 0 : index
    %c0_12 = arith.constant 0 : index
    %16 = vector.load %arg6[%c0_11, %c0_12] : memref<8x1xf32, #tpu.memory_space<vmem>>, vector<8x1xf32>
    tpu.vector_store %arg6[%c0_11, %c0_12], %15 {strides = array<i32>} : memref<8x1xf32, #tpu.memory_space<vmem>>, vector<8x1xf32>,
    return
  }
  func.func @transform_0(%arg0: i32) -> (i32, i32) {
    %c0_i32 = arith.constant 0 : i32
    %c0_i32_0 = arith.constant 0 : i32
    return %arg0, %c0_i32 : i32, i32
  }
  func.func @transform_1(%arg0: i32) -> (i32, i32) {
    %c0_i32 = arith.constant 0 : i32
    %c0_i32_0 = arith.constant 0 : i32
    %c0_i32_1 = arith.constant 0 : i32
    return %c0_i32, %c0_i32_0 : i32, i32
  }
  func.func @transform_2(%arg0: i32) -> (i32, i32) {
    %c0_i32 = arith.constant 0 : i32
    %c0_i32_0 = arith.constant 0 : i32
    %c0_i32_1 = arith.constant 0 : i32
    return %c0_i32, %c0_i32_0 : i32, i32
  }
  func.func @transform_3(%arg0: i32) -> (i32, i32) {
    %c0_i32 = arith.constant 0 : i32
    %c0_i32_0 = arith.constant 0 : i32
    %c0_i32_1 = arith.constant 0 : i32
    return %c0_i32, %c0_i32_0 : i32, i32
  }
  func.func @transform_4(%arg0: i32) -> (i32, i32) {
    %c0_i32 = arith.constant 0 : i32
    %c0_i32_0 = arith.constant 0 : i32
    %c0_i32_1 = arith.constant 0 : i32
    return %c0_i32, %c0_i32_0 : i32, i32
  }
  func.func @transform_5(%arg0: i32) -> (i32, i32) {
    %c0_i32 = arith.constant 0 : i32
    %c0_i32_0 = arith.constant 0 : i32
    return %arg0, %c0_i32 : i32, i32
  }
}

</mosaic_0001>

<bundles_post_ra>
// kernel: tpu_custom_call.1
= control target key start
LH: loop header
LB: loop body
LE: loop exit
PB: predicated region body
PF: predicated region fallthrough
CT: control target
= control target key end

     0   :  { %11 = vsyncpa [#allocation4], 0  ;;  %s561_s0 = inlined_call_operand.hbm [shape: f32[8,384], index: 0, kind: input, shape index: {}]   ;;  %s562_s1 = inlined_call_operand.hbm [shape: f32[384,256], index: 1, kind: input, shape index: {}]   ;;  %s563_s2 = inlined_call_operand.vmem [shape: f32[1,256], index: 2, kind: input, shape index: {}]   ;;  %s564_s3 = inlined_call_operand.vmem [shape: f32[1,256], index: 3, kind: input, shape index: {}]   ;;  %s565_s4 = inlined_call_operand.<no memory space> [shape: f32[1,1], index: 4, kind: input, shape index: {}]   ;;  %s566_s5 = inlined_call_operand.vmem [shape: f32[8,1], index: 5, kind: output, shape index: {}]  }
   0x1   :  { %12 = vsyncpa [#allocation6], 0  ;;  %s483_s18 = smov [#allocation3]   ;;  %s484_s20 = smov [#allocation5]  }
   0x2   :  { %s19_s19 = sshll.u32 %s483_s18, 4  ;;  %s28_s21 = sshll.u32 %s484_s20, 4  ;;  %s20_s19 = int_to_ptr.vmem [resolvable:$true] %s19_s19  ;;  %s518_s21 = int_to_ptr.vmem [resolvable:$true] %s28_s21 }
   0x3   :  { %s435_s24 = scalar_lea.hbm %s561_s0, 384 }
   0x4   :  { %p436_p0 = scmp.ne.s32.totalorder %s561_s0, %s435_s24  ;;  %p439_p1 = scmp.lt.u32.totalorder %s435_s24, %s561_s0 }
   0x6   :  { %p441_p2 = pnand %p439_p1, %p436_p0 }
   0x8   :  { %444 = shalt.err (!%p441_p2)
}
   0x9   :  { %s445_s29 = scalar_lea.vmem %s20_s19, 384  ;;  %p450_p4 = scmp.lt.s32.totalorder %s20_s19, %s20_s19 }
   0xa   :  { %p446_p3 = scmp.ne.s32.totalorder %s20_s19, %s445_s29  ;;  %p451_p5 = scmp.lt.s32.totalorder %s445_s29, %s445_s29 }
   0xc   :  { %p452_p6 = por %p451_p5, %p450_p4 }
   0xe   :  { %p453_p7 = pnand %p452_p6, %p446_p3 }
  0x10   :  { %456 = shalt.err (!%p453_p7)
}
  0x11   :  { %22 = dma.hbm_to_vmem [thread:$0]  %s561_s0, 384, %s20_s19, [#allocation4]  }
  0x12   :  { %s457_s9 = scalar_lea.hbm %s562_s1, 12288 }
  0x13   :  { %p458_p8 = scmp.ne.s32.totalorder %s562_s1, %s457_s9  ;;  %p461_p9 = scmp.lt.u32.totalorder %s457_s9, %s562_s1 }
  0x15   :  { %p463_p10 = pnand %p461_p9, %p458_p8 }
  0x17   :  { %466 = shalt.err (!%p463_p10)
}
  0x18   :  { %s467_s14 = scalar_lea.vmem %s518_s21, 12288  ;;  %p472_p12 = scmp.lt.s32.totalorder %s518_s21, %s518_s21 }
  0x19   :  { %p468_p11 = scmp.ne.s32.totalorder %s518_s21, %s467_s14  ;;  %p473_p13 = scmp.lt.s32.totalorder %s467_s14, %s467_s14 }
  0x1b   :  { %p474_p0 = por %p473_p13, %p472_p12 }
  0x1d   :  { %p475_p1 = pnand %p474_p0, %p468_p11 }
  0x1f   :  { %478 = shalt.err (!%p475_p1)
}
  0x20   :  { %s485_s0 = smov 256   ;;  %s486_s15 = smov 16  }
  0x21   :  { %34 = dma.hbm_to_vmem [thread:$0]  %s562_s1, 12288, %s518_s21, [#allocation6], %s485_s0, %s485_s0, %s486_s15  }
  0x22   :  { %479 = dma.done.wait [#allocation4], 384  }
  0x23   :  { %480 = vsyncadd [#allocation4], 4294966912 }
  0x24   :  { %481 = dma.done.wait [#allocation6], 12288  }
  0x25   :  { %482 = vsyncadd [#allocation6], 4294955008  ;;  %v487_v0 = vmov 0.0   ;;  %v51_v1 = vld [vmem:[#allocation5 + $0x8] sm:$0xff]  ;;  %v53_v2 = vld [vmem:[#allocation5 + $0x18] sm:$0xff]  ;;  %vm322_vm0 = vcmask 7168  }
  0x26   :  { %293 = vmatprep.mubr.f32.mxu0 %v487_v0  ;;  %v50_v3 = vld [vmem:[#allocation5] sm:$0xff]  ;;  %v330_v4 = vpack.c.bf16 %v53_v2, %v51_v1  ;;  %v52_v5 = vld [vmem:[#allocation5 + $0x10] sm:$0xff]  ;;  %v55_v6 = vld [vmem:[#allocation5 + $0x28] sm:$0xff] }
  0x27   :  { %v57_v7 = vld [vmem:[#allocation5 + $0x38] sm:$0xff]  ;;  %v332_v8 = vpack.c.bf16 %v52_v5, %v50_v3  ;;  %v54_v10 = vld [vmem:[#allocation5 + $0x20] sm:$0xff]  ;;  %v56_v11 = vld [vmem:[#allocation5 + $0x30] sm:$0xff] }
  0x28   :  { %v334_v9 = vpack.c.bf16 %v57_v7, %v55_v6  ;;  %v59_v12 = vld [vmem:[#allocation5 + $0x48] sm:$0xff]  ;;  %331 = vmatprep.subr.bf16.mxu1 %v330_v4  ;;  %v61_v13 = vld [vmem:[#allocation5 + $0x58] sm:$0xff]  ;;  %v336_v14 = vpack.c.bf16 %v56_v11, %v54_v10  ;;  %v58_v16 = vld [vmem:[#allocation5 + $0x40] sm:$0xff] }
  0x29   :  { %333 = vmatpush1.bf16.msra.mxu1 %v332_v8  ;;  %v338_v15 = vpack.c.bf16 %v61_v13, %v59_v12  ;;  %v60_v17 = vld [vmem:[#allocation5 + $0x50] sm:$0xff]  ;;  %v63_v18 = vld [vmem:[#allocation5 + $0x68] sm:$0xff]  ;;  %v65_v19 = vld [vmem:[#allocation5 + $0x78] sm:$0xff] }
  0x2a   :  { %335 = vmatprep.subr.bf16.mxu1 %v334_v9  ;;  %v340_v20 = vpack.c.bf16 %v60_v17, %v58_v16  ;;  %v342_v21 = vpack.c.bf16 %v65_v19, %v63_v18  ;;  %v62_v22 = vld [vmem:[#allocation5 + $0x60] sm:$0xff]  ;;  %v64_v23 = vld [vmem:[#allocation5 + $0x70] sm:$0xff]  ;;  %v67_v24 = vld [vmem:[#allocation5 + $0x88] sm:$0xff] }
  0x2b   :  { %v69_v25 = vld [vmem:[#allocation5 + $0x98] sm:$0xff]  ;;  %v344_v26 = vpack.c.bf16 %v64_v23, %v62_v22  ;;  %v115_v27 = vld [vmem:[#allocation5 + $0x208] sm:$0xff]  ;;  %v114_v29 = vld [vmem:[#allocation5 + $0x200] sm:$0xff] }
  0x2c   :  { %v117_v28 = vld [vmem:[#allocation5 + $0x218] sm:$0xff]  ;;  %v346_v30 = vpack.c.bf16 %v69_v25, %v67_v24  ;;  %v66_v31 = vld [vmem:[#allocation5 + $0x80] sm:$0xff]  ;;  %v68_v32 = vld [vmem:[#allocation5 + $0x90] sm:$0xff] }
  0x2d   :  { %337 = vmatpush1.bf16.msra.mxu1 %v336_v14  ;;  %v394_v33 = vpack.c.bf16 %v117_v28, %v115_v27  ;;  %v116_v34 = vld [vmem:[#allocation5 + $0x210] sm:$0xff]  ;;  %v71_v35 = vld [vmem:[#allocation5 + $0xa8] sm:$0xff]  ;;  %v73_v36 = vld [vmem:[#allocation5 + $0xb8] sm:$0xff]  ;;  %v348_v42 = vpack.c.bf16 %v68_v32, %v66_v31 }
  0x2e   :  { %339 = vmatprep.subr.bf16.mxu1 %v338_v15  ;;  %v396_v37 = vpack.c.bf16 %v116_v34, %v114_v29  ;;  %v119_v38 = vld [vmem:[#allocation5 + $0x228] sm:$0xff]  ;;  %v121_v39 = vld [vmem:[#allocation5 + $0x238] sm:$0xff]  ;;  %v118_v40 = vld [vmem:[#allocation5 + $0x220] sm:$0xff]  ;;  %v350_v47 = vpack.c.bf16 %v73_v36, %v71_v35 }
  0x2f   :  { %395 = vmatprep.subr.bf16.mxu0 %v394_v33  ;;  %v120_v41 = vld [vmem:[#allocation5 + $0x230] sm:$0xff]  ;;  %v70_v43 = vld [vmem:[#allocation5 + $0xa0] sm:$0xff]  ;;  %v398_v45 = vpack.c.bf16 %v121_v39, %v119_v38  ;;  %v75_v48 = vld [vmem:[#allocation5 + $0xc8] sm:$0xff] }
  0x30   :  { %v72_v44 = vld [vmem:[#allocation5 + $0xb0] sm:$0xff]  ;;  %397 = vmatpush1.bf16.msra.mxu0 %v396_v37  ;;  %v400_v46 = vpack.c.bf16 %v120_v41, %v118_v40  ;;  %v123_v49 = vld [vmem:[#allocation5 + $0x248] sm:$0xff]  ;;  %v125_v50 = vld [vmem:[#allocation5 + $0x258] sm:$0xff] }
  0x31   :  { %341 = vmatpush1.bf16.msra.mxu1 %v340_v20  ;;  %v77_v51 = vld [vmem:[#allocation5 + $0xd8] sm:$0xff]  ;;  %399 = vmatprep.subr.bf16.mxu0 %v398_v45  ;;  %v402_v52 = vpack.c.bf16 %v125_v50, %v123_v49  ;;  %v122_v53 = vld [vmem:[#allocation5 + $0x240] sm:$0xff]  ;;  %v124_v54 = vld [vmem:[#allocation5 + $0x250] sm:$0xff]  ;;  %v352_v55 = vpack.c.bf16 %v72_v44, %v70_v43 }
  0x32   :  { %343 = vmatprep.subr.bf16.mxu1 %v342_v21  ;;  %v74_v56 = vld [vmem:[#allocation5 + $0xc0] sm:$0xff]  ;;  %v404_v57 = vpack.c.bf16 %v124_v54, %v122_v53  ;;  %v127_v58 = vld [vmem:[#allocation5 + $0x268] sm:$0xff]  ;;  %v129_v59 = vld [vmem:[#allocation5 + $0x278] sm:$0xff]  ;;  %v354_v60 = vpack.c.bf16 %v77_v51, %v75_v48 }
  0x33   :  { %v76_v61 = vld [vmem:[#allocation5 + $0xd0] sm:$0xff]  ;;  %v406_v62 = vpack.c.bf16 %v129_v59, %v127_v58  ;;  %v126_v63 = vld [vmem:[#allocation5 + $0x260] sm:$0xff]  ;;  %v79_v1 = vld [vmem:[#allocation5 + $0xe8] sm:$0xff] }
  0x34   :  { %401 = vmatpush1.bf16.msra.mxu0 %v400_v46  ;;  %v128_v0 = vld [vmem:[#allocation5 + $0x270] sm:$0xff]  ;;  %v81_v2 = vld [vmem:[#allocation5 + $0xf8] sm:$0xff]  ;;  %v131_v3 = vld [vmem:[#allocation5 + $0x288] sm:$0xff]  ;;  %v356_v5 = vpack.c.bf16 %v76_v61, %v74_v56 }
  0x35   :  { %345 = vmatpush1.bf16.msra.mxu1 %v344_v26  ;;  %403 = vmatprep.subr.bf16.mxu0 %v402_v52  ;;  %v133_v4 = vld [vmem:[#allocation5 + $0x298] sm:$0xff]  ;;  %v78_v6 = vld [vmem:[#allocation5 + $0xe0] sm:$0xff]  ;;  %v80_v7 = vld [vmem:[#allocation5 + $0xf0] sm:$0xff]  ;;  %v408_v8 = vpack.c.bf16 %v128_v0, %v126_v63  ;;  %v358_v9 = vpack.c.bf16 %v81_v2, %v79_v1 }
  0x36   :  { %347 = vmatprep.subr.bf16.mxu1 %v346_v30  ;;  %v83_v10 = vld [vmem:[#allocation5 + $0x108] sm:$0xff]  ;;  %v410_v11 = vpack.c.bf16 %v133_v4, %v131_v3  ;;  %v130_v12 = vld [vmem:[#allocation5 + $0x280] sm:$0xff]  ;;  %v132_v13 = vld [vmem:[#allocation5 + $0x290] sm:$0xff]  ;;  %v360_v17 = vpack.c.bf16 %v80_v7, %v78_v6 }
  0x37   :  { %v85_v14 = vld [vmem:[#allocation5 + $0x118] sm:$0xff]  ;;  %v135_v15 = vld [vmem:[#allocation5 + $0x2a8] sm:$0xff]  ;;  %v82_v18 = vld [vmem:[#allocation5 + $0x100] sm:$0xff]  ;;  %v412_v20 = vpack.c.bf16 %v132_v13, %v130_v12 }
  0x38   :  { %405 = vmatpush1.bf16.msra.mxu0 %v404_v57  ;;  %v137_v16 = vld [vmem:[#allocation5 + $0x2b8] sm:$0xff]  ;;  %v84_v19 = vld [vmem:[#allocation5 + $0x110] sm:$0xff]  ;;  %v362_v21 = vpack.c.bf16 %v85_v14, %v83_v10  ;;  %v87_v22 = vld [vmem:[#allocation5 + $0x128] sm:$0xff] }
  0x39   :  { %349 = vmatpush1.bf16.msra.mxu1 %v348_v42  ;;  %407 = vmatprep.subr.bf16.mxu0 %v406_v62  ;;  %v414_v23 = vpack.c.bf16 %v137_v16, %v135_v15  ;;  %v134_v24 = vld [vmem:[#allocation5 + $0x2a0] sm:$0xff]  ;;  %v136_v25 = vld [vmem:[#allocation5 + $0x2b0] sm:$0xff]  ;;  %v89_v26 = vld [vmem:[#allocation5 + $0x138] sm:$0xff]  ;;  %v364_v29 = vpack.c.bf16 %v84_v19, %v82_v18 }
  0x3a   :  { %351 = vmatprep.subr.bf16.mxu1 %v350_v47  ;;  %v139_v27 = vld [vmem:[#allocation5 + $0x2c8] sm:$0xff]  ;;  %v141_v28 = vld [vmem:[#allocation5 + $0x2d8] sm:$0xff]  ;;  %v86_v30 = vld [vmem:[#allocation5 + $0x120] sm:$0xff]  ;;  %v416_v32 = vpack.c.bf16 %v136_v25, %v134_v24  ;;  %v366_v34 = vpack.c.bf16 %v89_v26, %v87_v22  ;;  %v148_v22 = vlaneseq }
  0x3b   :  { %v88_v31 = vld [vmem:[#allocation5 + $0x130] sm:$0xff]  ;;  %v91_v35 = vld [vmem:[#allocation5 + $0x148] sm:$0xff]  ;;  %v418_v36 = vpack.c.bf16 %v141_v28, %v139_v27  ;;  %v138_v37 = vld [vmem:[#allocation5 + $0x2c0] sm:$0xff] }
  0x3c   :  { %409 = vmatpush1.bf16.msra.mxu0 %v408_v8  ;;  %v48_v33 = vld [vmem:[#allocation3 + $0x8] sm:$0xff]  ;;  %v93_v39 = vld [vmem:[#allocation5 + $0x158] sm:$0xff]  ;;  %v143_v40 = vld [vmem:[#allocation5 + $0x2e8] sm:$0xff]  ;;  %v368_v42 = vpack.c.bf16 %v88_v31, %v86_v30 }
  0x3d   :  { %353 = vmatpush1.bf16.msra.mxu1 %v352_v55  ;;  %411 = vmatprep.subr.bf16.mxu0 %v410_v11  ;;  %v140_v38 = vld [vmem:[#allocation5 + $0x2d0] sm:$0xff]  ;;  %v145_v41 = vld [vmem:[#allocation5 + $0x2f8] sm:$0xff]  ;;  %v90_v43 = vld [vmem:[#allocation5 + $0x140] sm:$0xff]  ;;  %v370_v45 = vpack.c.bf16 %v93_v39, %v91_v35 }
  0x3e   :  { %355 = vmatprep.subr.bf16.mxu1 %v354_v60  ;;  %222 = vmatprep.mubr.f32.mxu1 %v48_v33  ;;  %v420_v44 = vpack.c.bf16 %v140_v38, %v138_v37  ;;  %v92_v46 = vld [vmem:[#allocation5 + $0x150] sm:$0xff]  ;;  %v422_v47 = vpack.c.bf16 %v145_v41, %v143_v40  ;;  %v142_v48 = vld [vmem:[#allocation5 + $0x2e0] sm:$0xff]  ;;  %v95_v50 = vld [vmem:[#allocation5 + $0x168] sm:$0xff] }
  0x3f   :  { %v144_v49 = vld [vmem:[#allocation5 + $0x2f0] sm:$0xff]  ;;  %v97_v51 = vld [vmem:[#allocation5 + $0x178] sm:$0xff]  ;;  %v372_v52 = vpack.c.bf16 %v92_v46, %v90_v43  ;;  %v94_v55 = vld [vmem:[#allocation5 + $0x160] sm:$0xff]  ;;  %v320_v43 = vstv %s565_s4 }
  0x40   :  { %413 = vmatpush1.bf16.msra.mxu0 %v412_v20  ;;  %v424_v53 = vpack.c.bf16 %v144_v49, %v142_v48  ;;  %v374_v54 = vpack.c.bf16 %v97_v51, %v95_v50  ;;  %v96_v56 = vld [vmem:[#allocation5 + $0x170] sm:$0xff]  ;;  %v99_v57 = vld [vmem:[#allocation5 + $0x188] sm:$0xff]  ;;  %v101_v58 = vld [vmem:[#allocation5 + $0x198] sm:$0xff] }
  0x41   :  { %357 = vmatpush1.bf16.msra.mxu1 %v356_v5  ;;  %415 = vmatprep.subr.bf16.mxu0 %v414_v23  ;;  %v376_v59 = vpack.c.bf16 %v96_v56, %v94_v55  ;;  %v49_v60 = vld [vmem:[#allocation3 + $0x10] sm:$0xff]  ;;  %v378_v61 = vpack.c.bf16 %v101_v58, %v99_v57  ;;  %v98_v62 = vld [vmem:[#allocation5 + $0x180] sm:$0xff]  ;;  %v100_v63 = vld [vmem:[#allocation5 + $0x190] sm:$0xff]  ;;  %v149_v23 = vshrl.u32 %v148_v22, 7 }
  0x42   :  { %359 = vmatprep.subr.bf16.mxu1 %v358_v9  ;;  %v103_v0 = vld [vmem:[#allocation5 + $0x1a8] sm:$0xff]  ;;  %v105_v1 = vld [vmem:[#allocation5 + $0x1b8] sm:$0xff]  ;;  %v380_v2 = vpack.c.bf16 %v100_v63, %v98_v62  ;;  %v102_v4 = vld [vmem:[#allocation5 + $0x1a0] sm:$0xff] }
  0x43   :  { %v382_v3 = vpack.c.bf16 %v105_v1, %v103_v0  ;;  %v104_v5 = vld [vmem:[#allocation5 + $0x1b0] sm:$0xff]  ;;  %v107_v6 = vld [vmem:[#allocation5 + $0x1c8] sm:$0xff]  ;;  %v109_v7 = vld [vmem:[#allocation5 + $0x1d8] sm:$0xff]  ;;  %v150_v24 = vsub.s32 0, %v149_v23  ;;  %v154_v26 = vsub.s32 1, %v149_v23 }
  0x44   :  { %417 = vmatpush1.bf16.msra.mxu0 %v416_v32  ;;  %v384_v8 = vpack.c.bf16 %v104_v5, %v102_v4  ;;  %v386_v9 = vpack.c.bf16 %v109_v7, %v107_v6  ;;  %v106_v10 = vld [vmem:[#allocation5 + $0x1c0] sm:$0xff]  ;;  %v108_v11 = vld [vmem:[#allocation5 + $0x1d0] sm:$0xff]  ;;  %v111_v12 = vld [vmem:[#allocation5 + $0x1e8] sm:$0xff] }
  0x45   :  { %361 = vmatpush1.bf16.msra.mxu1 %v360_v17  ;;  %419 = vmatprep.subr.bf16.mxu0 %v418_v36  ;;  %v113_v13 = vld [vmem:[#allocation5 + $0x1f8] sm:$0xff]  ;;  %v388_v14 = vpack.c.bf16 %v108_v11, %v106_v10  ;;  %v110_v16 = vld [vmem:[#allocation5 + $0x1e0] sm:$0xff]  ;;  %v112_v17 = vld [vmem:[#allocation5 + $0x1f0] sm:$0xff] }
  0x46   :  { %363 = vmatprep.subr.bf16.mxu1 %v362_v21  ;;  %v390_v15 = vpack.c.bf16 %v113_v13, %v111_v12  ;;  %v392_v18 = vpack.c.bf16 %v112_v17, %v110_v16  ;;  %v47_v19 = vld [vmem:[#allocation3] sm:$0xff] }
  0x47   :  { %v146_v25 = vld [vmem:[%s563_s2] sm:$0x3] }
  0x48   :  { %421 = vmatpush1.bf16.msra.mxu0 %v420_v44  ;;  %v151_v27 = vrot.slane %v146_v25, %v150_v24  ;;  %v155_v28 = vrot.slane %v146_v25, %v154_v26  ;;  %v302_v30 = vld [vmem:[%s564_s3] sm:$0x3] }
  0x49   :  { %365 = vmatpush1.bf16.msra.mxu1 %v364_v29  ;;  %423 = vmatprep.subr.bf16.mxu0 %v422_v47  ;;  %v307_v35 = vrot.slane %v302_v30, %v150_v24  ;;  %v311_v37 = vrot.slane %v302_v30, %v154_v26 }
  0x4a   :  { %367 = vmatprep.subr.bf16.mxu1 %v366_v34 }
  0x4c   :  { %425 = vmatpush1.bf16.msra.mxu0 %v424_v53 }
  0x4d   :  { %369 = vmatpush1.bf16.msra.mxu1 %v368_v42 }
  0x4e   :  { %371 = vmatprep.subr.bf16.mxu1 %v370_v45 }
  0x4f   :  { %294 = vmatmul.mubr.f32.vlgmr.msra.gmra.mrb[0].mxu0 %v49_v60 }
  0x51   :  { %373 = vmatpush1.bf16.msra.mxu1 %v372_v52 }
  0x52   :  { %375 = vmatprep.subr.bf16.mxu1 %v374_v54 }
  0x55   :  { %377 = vmatpush1.bf16.msra.mxu1 %v376_v59 }
  0x56   :  { %379 = vmatprep.subr.bf16.mxu1 %v378_v61 }
  0x59   :  { %381 = vmatpush1.bf16.msra.mxu1 %v380_v2 }
  0x5a   :  { %383 = vmatprep.subr.bf16.mxu1 %v382_v3 }
  0x5d   :  { %385 = vmatpush1.bf16.msra.mxu1 %v384_v8 }
  0x5e   :  { %387 = vmatprep.subr.bf16.mxu1 %v386_v9 }
  0x61   :  { %389 = vmatpush1.bf16.msra.mxu1 %v388_v14 }
  0x62   :  { %391 = vmatprep.subr.bf16.mxu1 %v390_v15 }
  0x65   :  { %393 = vmatpush1.bf16.msra.mxu1 %v392_v18 }
  0x68   :  { %223 = vmatmul.mubr.f32.vlgmr.msra.gmra.mrb[0].mxu1 %v47_v19 }
 0x122   :  { %v295_v20 = vpop.f32.mrb[0].mxu0 }
 0x123   :  { %v297_v21 = vpop.f32.mrb[1].mxu0 }
 0x13b   :  { %v224_v29 = vpop.f32.mrb[0].mxu1 }
 0x13c   :  { %v225_v31 = vadd.f32 %v224_v29, %v151_v27  ;;  %v226_v32 = vpop.f32.mrb[1].mxu1 }
 0x13d   :  { %v227_v33 = vadd.f32 %v226_v32, %v155_v28 }
 0x13e   :  { %v296_v34 = vadd.f32 %v295_v20, %v225_v31 }
 0x13f   :  { %v298_v36 = vadd.f32 %v297_v21, %v227_v33 }
 0x140   :  { %v300_v38 = vmax.f32 %v296_v34, 0.0 }
 0x141   :  { %v301_v39 = vmax.f32 %v298_v36, 0.0 }
 0x142   :  { %v314_v40 = vmul.f32 %v307_v35, %v300_v38 }
 0x143   :  { %v315_v41 = vmul.f32 %v311_v37, %v301_v39 }
 0x145   :  { %v316_v42 = vadd.f32 %v315_v41, %v314_v40 }
 0x147   :  { %317 = vadd.xlane.f32.xlu0 %v316_v42 }
 0x1d4   :  { %v318_v44 = vpop.xlane.xlu0 %317 }
 0x1d5   :  { %v321_v45 = vadd.f32 %v320_v43, %v318_v44 }
 0x1d7   :  { %323 = vst.msk [vmem:[%s566_s5] sm:$0xff] %vm322_vm0, %v321_v45 }
 0x1d8   :  { %328 = vsyncpa [#allocation4], 1 }
 0x1d9   :  { %329 = vsyncpa [#allocation6], 1 }

</bundles_post_ra>
